<compile_context>
chip_gen: v7x
topology: tpu7x:2x2x1
jax: 0.10.0
libtpu: 0.0.40
codegen_flags: <defaults>
</compile_context>

<pallas_src>
import jax
import jax.numpy as jnp
from jax.experimental import pallas as pl
from jax.experimental.pallas import tpu as pltpu


def _round_up(x, m):
    return (x + m - 1) // m * m


def _vmem_budget_bytes():
    """~75% of physical VMEM: <=48 MiB on v7x, <=96 MiB on v5e/v6e."""
    try:
        cap = int(pltpu.get_tpu_info().vmem_capacity_bytes)
    except Exception:
        cap = 64 * 1024 * 1024  # conservative default (v7x per-TC VMEM)
    return (cap * 3) // 4


# ----------------------------------------------------------------------------
# Kernel
# ----------------------------------------------------------------------------
def _bilinear_joint_kernel(xd_ref, xt_ref, w_ref, b_ref, o_ref):
    """One grid step of the (nB, nO, nI) grid.

    xd_ref : (tB, tI)        i-th chunk of xd columns (pre-split in wrapper)
    xt_ref : (tB, Cj_pad)    full (padded) second in_channels axis
    w_ref  : (tI*Cj_pad, tO) matching row-slice of the reshaped weight
    b_ref  : (1, tO)         bias
    o_ref  : (tB, tO) f32    output block, resident across the i axis
    """
    i = pl.program_id(2)

    @pl.when(i == 0)
    def _():
        o_ref[...] = jnp.zeros_like(o_ref)

    xd_i = xd_ref[...]                       # (tB, tI)
    xt = xt_ref[...]                         # (tB, Cj)
    t_i = xd_i.shape[1]
    cj = xt.shape[1]

    # Lane-major Kronecker features, built directly in the 2-D matmul layout
    # (no 3-D outer product + reshape => no full sublane/lane relayout):
    #   k[b, p*Cj + q] = xd[b, p] * xt[b, q]
    k = jnp.repeat(xd_i, cj, axis=1) * jnp.tile(xt, (1, t_i))
    k = k.astype(w_ref.dtype)

    # One MXU matmul per step, f32 accumulation directly into the resident
    # output block (its block index is constant across the i axis).
    o_ref[...] += jnp.dot(k, w_ref[...], preferred_element_type=jnp.float32)

    @pl.when(i == pl.num_programs(2) - 1)
    def _():
        o_ref[...] = jnp.maximum(o_ref[...] + b_ref[...], 0.0)


# ----------------------------------------------------------------------------
# Tiling heuristics (VMEM-budgeted)
# ----------------------------------------------------------------------------
def _static_tiles(C, O, w_bytes):
    o_pad = _round_up(O, 128)
    # nO = 1 when O is modest -> k built once per (b, i), not per (b, o, i).
    if o_pad <= 512:
        t_o = o_pad
    elif o_pad % 256 == 0:
        t_o = 256
    else:
        t_o = 128
    cj_pad = _round_up(C, 8)
    # Keep tI*Cj <= ~4096 (f32 W) / ~8192 (bf16 W): double-buffered W tile
    # stays at a few MiB, well inside every generation's VMEM (incl. v7x).
    k_cap = 8192 if w_bytes <= 2 else 4096
    t_i = max(1, min(C, k_cap // cj_pad))
    c_i_pad = _round_up(C, t_i)
    return t_i, t_o, cj_pad, o_pad, c_i_pad


def _batch_tile(B, t_i, t_o, cj_pad, w_bytes, x_bytes, n_o, budget):
    # W is re-streamed from HBM once per batch tile, so prefer a big tB
    # (256-512) and shrink only if the working set exceeds the VMEM budget.
    t_b = min(_round_up(B, 8), 512)

    def working_set(tb):
        w_tile = 2 * t_i * cj_pad * t_o * w_bytes    # double-buffered W stream
        k_live = 2 * tb * t_i * cj_pad * 4           # k value + build temps
        xd_t = 2 * tb * t_i * x_bytes
        xt_t = 2 * tb * cj_pad * x_bytes
        out_t = 2 * tb * t_o * 4
        return w_tile + k_live + xd_t + xt_t + out_t + 2 * t_o * 4

    while t_b > 8 and working_set(t_b) > budget:
        t_b = max(8, _round_up(t_b // 2, 8))

    # v7x has 2 TensorCores: expose at least 2 tiles across the "parallel"
    # grid axes so one core does not idle (worst case: one extra W re-stream
    # on single-core chips).
    if n_o == 1 and t_b >= B and B >= 16:
        t_b = _round_up((B + 1) // 2, 8)
    return t_b


# ----------------------------------------------------------------------------
# Wrapper
# ----------------------------------------------------------------------------
def make_bilinear_joint(w, bias, *, w_dtype=jnp.float32, allow_fallback=True):
    """Preprocess the nn.Bilinear weight ONCE (hoisted out of the per-call
    path) and return `f(xd, xt) -> ReLU(Bilinear(xd, xt))`.

    w: (O, C, C), bias: (O,). Pass w_dtype=jnp.bfloat16 to halve W HBM/VMEM
    traffic (validate accuracy: the contraction length is C^2).
    """
    O, C, C2 = w.shape
    if C != C2:
        raise ValueError("Bilinear_Joint uses the same in_channels twice")
    w_bytes = jnp.dtype(w_dtype).itemsize
    budget = _vmem_budget_bytes()

    t_i, t_o, cj_pad, o_pad, c_i_pad = _static_tiles(C, O, w_bytes)
    n_i = c_i_pad // t_i
    n_o = o_pad // t_o

    # Hoisted weight relayout (full C^2*O read+write) -- done once, not per call:
    # (O, Ci, Cj) -> pad -> (Ci, Cj, O) -> (Ci*Cj, O); row index p*Cj_pad + q
    # matches the in-kernel Kronecker-feature layout.
    w_p = jnp.pad(w, ((0, o_pad - O), (0, c_i_pad - C), (0, cj_pad - C)))
    w2 = jnp.transpose(w_p, (1, 2, 0)).reshape(c_i_pad * cj_pad, o_pad)
    w2 = jax.block_until_ready(w2.astype(w_dtype))
    bias_p = jnp.pad(bias, (0, o_pad - O)).reshape(1, o_pad).astype(jnp.float32)

    def call(xd, xt):
        B = xd.shape[0]
        # Small-problem fallback: a Pallas launch cannot pay off below a few
        # MFLOP (padding + per-step overhead dominate); let XLA handle it.
        if allow_fallback and 2.0 * B * C * C * O < 1e7:
            out = jnp.einsum("bi,oij,bj->bo", xd, w, xt) + bias[None, :]
            return jnp.maximum(out, 0.0).astype(xd.dtype)

        x_bytes = jnp.dtype(xd.dtype).itemsize
        t_b = _batch_tile(B, t_i, t_o, cj_pad, w_bytes, x_bytes, n_o, budget)
        b_pad = _round_up(B, t_b)
        n_b = b_pad // t_b

        # Pad (zero rows/cols contribute nothing) and pre-split xd's i axis
        # into (nI, B_pad, tI) so the kernel needs no dynamic lane slicing.
        xd_p = jnp.pad(xd, ((0, b_pad - B), (0, c_i_pad - C)))
        xd3 = jnp.transpose(xd_p.reshape(b_pad, n_i, t_i), (1, 0, 2))
        xt_p = jnp.pad(xt, ((0, b_pad - B), (0, cj_pad - C)))

        cost = pl.CostEstimate(
            flops=int(2 * b_pad * c_i_pad * cj_pad * o_pad),
            transcendentals=0,
            bytes_accessed=int((xd3.size + xt_p.size) * x_bytes
                               + n_b * w2.size * w_bytes
                               + b_pad * o_pad * 4),
        )

        out = pl.pallas_call(
            _bilinear_joint_kernel,
            out_shape=jax.ShapeDtypeStruct((b_pad, o_pad), jnp.float32),
            grid_spec=pltpu.PrefetchScalarGridSpec(
                num_scalar_prefetch=0,
                grid=(n_b, n_o, n_i),                     # reduction axis last
                in_specs=[
                    # xd chunk: (tB, tI); new (tiny) block every i step.
                    pl.BlockSpec((None, t_b, t_i), lambda b, o, i: (i, b, 0)),
                    # xt: full padded j axis, resident across o and i.
                    pl.BlockSpec((t_b, cj_pad), lambda b, o, i: (b, 0)),
                    # W stream: the only large block whose index changes every
                    # inner step; double-buffered by the pipeline.
                    # TODO(synk): if the W DMA is still exposed at large C,
                    # add pipeline_mode=pl.Buffered(3) here (VMEM permitting).
                    pl.BlockSpec((t_i * cj_pad, t_o), lambda b, o, i: (i, o)),
                    pl.BlockSpec((1, t_o), lambda b, o, i: (0, o)),     # bias
                ],
                out_specs=pl.BlockSpec((t_b, t_o), lambda b, o, i: (b, o)),
            ),
            compiler_params=pltpu.CompilerParams(
                dimension_semantics=("parallel", "parallel", "arbitrary"),
                vmem_limit_bytes=int(budget),
            ),
            cost_estimate=cost,
        )(xd3, xt_p, w2, bias_p)

        return out[:B, :O].astype(xd.dtype)

    return call


def bilinear_joint(xd, xt, w, bias, **kwargs):
    """One-shot convenience wrapper (weight prep is NOT cached across calls;
    prefer make_bilinear_joint for static weights)."""
    return make_bilinear_joint(w, bias, **kwargs)(xd, xt)


def reference_bilinear_joint(xd, xt, w, bias):
    out = jnp.einsum("bi,oij,bj->bo", xd, w, xt) + bias[None, :]
    return jnp.maximum(out, 0.0)


if __name__ == "__main__":
    key = jax.random.PRNGKey(0)
    B, C_IN, C_OUT = 8, 32, 16

    k1, k2, k3, k4 = jax.random.split(key, 4)
    xd = jax.random.normal(k1, (B, C_IN), dtype=jnp.float32)
    xt = jax.random.normal(k2, (B, C_IN), dtype=jnp.float32)

    # nn.Bilinear default init: U(-1/sqrt(in_channels), 1/sqrt(in_channels))
    bound = 1.0 / jnp.sqrt(jnp.float32(C_IN))
    w = jax.random.uniform(k3, (C_OUT, C_IN, C_IN), dtype=jnp.float32,
                           minval=-bound, maxval=bound)
    bias = jax.random.uniform(k4, (C_OUT,), dtype=jnp.float32,
                              minval=-bound, maxval=bound)

    ref = reference_bilinear_joint(xd, xt, w, bias)

    # Force the Pallas path (the default wrapper would route a problem this
    # small to the einsum fallback).
    pallas_fn = make_bilinear_joint(w, bias, allow_fallback=False)
    out = jax.block_until_ready(pallas_fn(xd, xt))
    assert out.shape == (B, C_OUT)
    assert jnp.allclose(out, ref, atol=1e-4, rtol=1e-4)

    # Default entry point (einsum fallback at this tiny size) must agree too.
    out_default = jax.block_until_ready(bilinear_joint(xd, xt, w, bias))
    assert jnp.allclose(out_default, ref, atol=1e-4, rtol=1e-4)

    print("KERNEL_OK")
</pallas_src>

<mosaic_0001>
module attributes {stable_mosaic.version = 11 : i64} {
  func.func @_bilinear_joint_kernel(%arg0: i32, %arg1: i32, %arg2: i32, %arg3: memref<1x8x32xf32, #tpu.memory_space<vmem>>, %arg4: memref<8x32xf32, #tpu.memory_space<vmem>>, %arg5: memref<1024x128xf32, #tpu.memory_space<vmem>>, %arg6: memref<1x128xf32, #tpu.memory_space<vmem>>, %arg7: memref<8x128xf32, #tpu.memory_space<vmem>>) attributes {dimension_semantics = [#tpu.dimension_semantics<parallel>, #tpu.dimension_semantics<parallel>, #tpu.dimension_semantics<arbitrary>], iteration_bounds = array<i64: 1, 1, 1>, scalar_prefetch = 0 : i64, scratch_operands = 0 : i64, tpu.core_type = #tpu.core_type<tc>, window_params = [{transform_indices = @transform_0, window_bounds = array<i64: 1, 8, 32>}, {transform_indices = @transform_1, window_bounds = array<i64: 8, 32>}, {transform_indices = @transform_2, window_bounds = array<i64: 1024, 128>}, {transform_indices = @transform_3, window_bounds = array<i64: 1, 128>}, {transform_indices = @transform_4, window_bounds = array<i64: 8, 128>}]} {
    %c0_i32 = arith.constant 0 : i32
    %0 = arith.cmpi eq, %arg2, %c0_i32 : i32
    %1 = arith.extui %0 : i1 to i32
    %c0_i32_0 = arith.constant 0 : i32
    %2 = arith.cmpi ne, %1, %c0_i32_0 : i32
    scf.if %2 {
      %cst_13 = arith.constant 0.000000e+00 : f32
      %19 = vector.broadcast %cst_13 : f32 to vector<8x128xf32>
      %c0_14 = arith.constant 0 : index
      %c0_15 = arith.constant 0 : index
      %20 = vector.load %arg7[%c0_14, %c0_15] : memref<8x128xf32, #tpu.memory_space<vmem>>, vector<8x128xf32>
      tpu.vector_store %arg7[%c0_14, %c0_15], %19 {strides = array<i32>} : memref<8x128xf32, #tpu.memory_space<vmem>>, vector<8x128xf32>,
    } else {
    }
    %c0 = arith.constant 0 : index
    %c0_1 = arith.constant 0 : index
    %c0_2 = arith.constant 0 : index
    %3 = vector.load %arg3[%c0, %c0_1, %c0_2] : memref<1x8x32xf32, #tpu.memory_space<vmem>>, vector<1x8x32xf32>
    %4 = vector.shape_cast %3 : vector<1x8x32xf32> to vector<8x32xf32>
    %c0_3 = arith.constant 0 : index
    %c0_4 = arith.constant 0 : index
    %5 = vector.load %arg4[%c0_3, %c0_4] : memref<8x32xf32, #tpu.memory_space<vmem>>, vector<8x32xf32>
    %6 = vector.shape_cast %4 : vector<8x32xf32> to vector<8x32x1xf32>
    %7 = vector.broadcast %6 : vector<8x32x1xf32> to vector<8x32x32xf32>
    %8 = vector.shape_cast %7 : vector<8x32x32xf32> to vector<8x1024xf32>
    %9 = tpu.concatenate %5, %5, %5, %5, %5, %5, %5, %5, %5, %5, %5, %5, %5, %5, %5, %5, %5, %5, %5, %5, %5, %5, %5, %5, %5, %5, %5, %5, %5, %5, %5, %5 in 1 : vector<8x32xf32>, vector<8x32xf32>, vector<8x32xf32>, vector<8x32xf32>, vector<8x32xf32>, vector<8x32xf32>, vector<8x32xf32>, vector<8x32xf32>, vector<8x32xf32>, vector<8x32xf32>, vector<8x32xf32>, vector<8x32xf32>, vector<8x32xf32>, vector<8x32xf32>, vector<8x32xf32>, vector<8x32xf32>, vector<8x32xf32>, vector<8x32xf32>, vector<8x32xf32>, vector<8x32xf32>, vector<8x32xf32>, vector<8x32xf32>, vector<8x32xf32>, vector<8x32xf32>, vector<8x32xf32>, vector<8x32xf32>, vector<8x32xf32>, vector<8x32xf32>, vector<8x32xf32>, vector<8x32xf32>, vector<8x32xf32>, vector<8x32xf32> -> vector<8x1024xf32>
    %10 = arith.mulf %8, %9 : vector<8x1024xf32>
    %c0_5 = arith.constant 0 : index
    %c0_6 = arith.constant 0 : index
    %11 = vector.load %arg7[%c0_5, %c0_6] : memref<8x128xf32, #tpu.memory_space<vmem>>, vector<8x128xf32>
    %c0_7 = arith.constant 0 : index
    %c0_8 = arith.constant 0 : index
    %12 = vector.load %arg5[%c0_7, %c0_8] : memref<1024x128xf32, #tpu.memory_space<vmem>>, vector<1024x128xf32>
    %cst = arith.constant dense<0.000000e+00> : vector<8x128xf32>
    %13 = tpu.matmul %10, %12, %cst {dimension_numbers = #tpu.dot_dimension_numbers<[1], [0], [0], [1], [0, 0, 1, 1], [], []>} : vector<8x1024xf32>, vector<1024x128xf32>, vector<8x128xf32> -> vector<8x128xf32>
    %14 = arith.addf %11, %13 : vector<8x128xf32>
    %c0_9 = arith.constant 0 : index
    %c0_10 = arith.constant 0 : index
    %15 = vector.load %arg7[%c0_9, %c0_10] : memref<8x128xf32, #tpu.memory_space<vmem>>, vector<8x128xf32>
    tpu.vector_store %arg7[%c0_9, %c0_10], %14 {strides = array<i32>} : memref<8x128xf32, #tpu.memory_space<vmem>>, vector<8x128xf32>,
    %c0_i32_11 = arith.constant 0 : i32
    %16 = arith.cmpi eq, %arg2, %c0_i32_11 : i32
    %17 = arith.extui %16 : i1 to i32
    %c0_i32_12 = arith.constant 0 : i32
    %18 = arith.cmpi ne, %17, %c0_i32_12 : i32
    scf.if %18 {
      %c0_13 = arith.constant 0 : index
      %c0_14 = arith.constant 0 : index
      %19 = vector.load %arg7[%c0_13, %c0_14] : memref<8x128xf32, #tpu.memory_space<vmem>>, vector<8x128xf32>
      %c0_15 = arith.constant 0 : index
      %c0_16 = arith.constant 0 : index
      %20 = vector.load %arg6[%c0_15, %c0_16] : memref<1x128xf32, #tpu.memory_space<vmem>>, vector<1x128xf32>
      %21 = vector.broadcast %20 : vector<1x128xf32> to vector<8x128xf32>
      %22 = arith.addf %19, %21 : vector<8x128xf32>
      %cst_17 = arith.constant 0.000000e+00 : f32
      %23 = vector.broadcast %cst_17 : f32 to vector<8x128xf32>
      %24 = arith.maximumf %22, %23 : vector<8x128xf32>
      %c0_18 = arith.constant 0 : index
      %c0_19 = arith.constant 0 : index
      %25 = vector.load %arg7[%c0_18, %c0_19] : memref<8x128xf32, #tpu.memory_space<vmem>>, vector<8x128xf32>
      tpu.vector_store %arg7[%c0_18, %c0_19], %24 {strides = array<i32>} : memref<8x128xf32, #tpu.memory_space<vmem>>, vector<8x128xf32>,
    } else {
    }
    return
  }
  func.func @transform_0(%arg0: i32, %arg1: i32, %arg2: i32) -> (i32, i32, i32) {
    %c0_i32 = arith.constant 0 : i32
    %c0_i32_0 = arith.constant 0 : i32
    return %arg2, %arg0, %c0_i32 : i32, i32, i32
  }
  func.func @transform_1(%arg0: i32, %arg1: i32, %arg2: i32) -> (i32, i32) {
    %c0_i32 = arith.constant 0 : i32
    %c0_i32_0 = arith.constant 0 : i32
    return %arg0, %c0_i32 : i32, i32
  }
  func.func @transform_2(%arg0: i32, %arg1: i32, %arg2: i32) -> (i32, i32) {
    %c0_i32 = arith.constant 0 : i32
    return %arg2, %arg1 : i32, i32
  }
  func.func @transform_3(%arg0: i32, %arg1: i32, %arg2: i32) -> (i32, i32) {
    %c0_i32 = arith.constant 0 : i32
    %c0_i32_0 = arith.constant 0 : i32
    return %c0_i32, %arg1 : i32, i32
  }
  func.func @transform_4(%arg0: i32, %arg1: i32, %arg2: i32) -> (i32, i32) {
    %c0_i32 = arith.constant 0 : i32
    return %arg0, %arg1 : i32, i32
  }
}

</mosaic_0001>

<bundles_post_ra>
// kernel: tpu_custom_call.1
= control target key start
LH: loop header
LB: loop body
LE: loop exit
PB: predicated region body
PF: predicated region fallthrough
CT: control target
= control target key end

     0   :  { %9 = vsyncpa [#allocation3], 0  ;;  %s2099_s0 = inlined_call_operand.hbm [shape: f32[1,8,32], index: 0, kind: input, shape index: {}]   ;;  %s2100_s1 = inlined_call_operand.hbm [shape: f32[8,32], index: 1, kind: input, shape index: {}]   ;;  %s2101_s2 = inlined_call_operand.hbm [shape: f32[1024,128], index: 2, kind: input, shape index: {}]   ;;  %s2102_s3 = inlined_call_operand.vmem [shape: f32[1,128], index: 3, kind: input, shape index: {}]   ;;  %s2103_s4 = inlined_call_operand.hbm [shape: f32[8,128], index: 4, kind: output, shape index: {}]  }
   0x1   :  { %10 = vsyncpa [#allocation6], 0 }
   0x2   :  { %11 = vsyncpa [#allocation4], 0  ;;  %s1718_s15 = smov [#allocation5]   ;;  %s1719_s17 = smov [#allocation2]  }
   0x3   :  { %s28_s16 = sshll.u32 %s1718_s15, 4  ;;  %s18_s18 = sshll.u32 %s1719_s17, 4  ;;  %s29_s16 = int_to_ptr.vmem [resolvable:$true] %s28_s16  ;;  %s19_s18 = int_to_ptr.vmem [resolvable:$true] %s18_s18 }
   0x4   :  { %s1624_s21 = scalar_lea.hbm %s2100_s1, 128 }
   0x5   :  { %p1625_p0 = scmp.ne.s32.totalorder %s2100_s1, %s1624_s21  ;;  %p1628_p1 = scmp.lt.u32.totalorder %s1624_s21, %s2100_s1 }
   0x7   :  { %p1630_p2 = pnand %p1628_p1, %p1625_p0 }
   0x9   :  { %1633 = shalt.err (!%p1630_p2)
}
   0xa   :  { %s1634_s26 = scalar_lea.vmem %s29_s16, 128  ;;  %p1639_p4 = scmp.lt.s32.totalorder %s29_s16, %s29_s16 }
   0xb   :  { %p1635_p3 = scmp.ne.s32.totalorder %s29_s16, %s1634_s26  ;;  %p1640_p5 = scmp.lt.s32.totalorder %s1634_s26, %s1634_s26 }
   0xd   :  { %p1641_p6 = por %p1640_p5, %p1639_p4 }
   0xf   :  { %p1642_p7 = pnand %p1641_p6, %p1635_p3 }
  0x11   :  { %1645 = shalt.err (!%p1642_p7)
}
  0x12   :  { %31 = dma.hbm_to_vmem [thread:$0]  %s2100_s1, 128, %s29_s16, [#allocation6]  }
  0x13   :  { %s1646_s5 = scalar_lea.hbm %s2099_s0, 128 }
  0x14   :  { %p1647_p8 = scmp.ne.s32.totalorder %s2099_s0, %s1646_s5  ;;  %p1650_p9 = scmp.lt.u32.totalorder %s1646_s5, %s2099_s0 }
  0x16   :  { %p1652_p10 = pnand %p1650_p9, %p1647_p8 }
  0x18   :  { %1655 = shalt.err (!%p1652_p10)
}
  0x19   :  { %s1656_s10 = scalar_lea.vmem %s19_s18, 128  ;;  %p1661_p12 = scmp.lt.s32.totalorder %s19_s18, %s19_s18 }
  0x1a   :  { %p1657_p11 = scmp.ne.s32.totalorder %s19_s18, %s1656_s10  ;;  %p1662_p13 = scmp.lt.s32.totalorder %s1656_s10, %s1656_s10 }
  0x1c   :  { %p1663_p0 = por %p1662_p13, %p1661_p12 }
  0x1e   :  { %p1664_p1 = pnand %p1663_p0, %p1657_p11 }
  0x20   :  { %1667 = shalt.err (!%p1664_p1)
}
  0x21   :  { %21 = dma.hbm_to_vmem [thread:$0]  %s2099_s0, 128, %s19_s18, [#allocation3]  }
  0x22   :  { %s1720_s12 = smov [#allocation7]   ;;  %s1668_s16 = scalar_lea.hbm %s2101_s2, 16384 }
  0x23   :  { %s37_s13 = sshll.u32 %s1720_s12, 4  ;;  %p1669_p2 = scmp.ne.s32.totalorder %s2101_s2, %s1668_s16  ;;  %s38_s13 = int_to_ptr.vmem [resolvable:$true] %s37_s13 }
  0x24   :  { %p1672_p3 = scmp.lt.u32.totalorder %s1668_s16, %s2101_s2 }
  0x26   :  { %p1674_p4 = pnand %p1672_p3, %p1669_p2 }
  0x28   :  { %1677 = shalt.err (!%p1674_p4)
}
  0x29   :  { %s1678_s22 = scalar_lea.vmem %s38_s13, 16384  ;;  %p1683_p6 = scmp.lt.s32.totalorder %s38_s13, %s38_s13 }
  0x2a   :  { %p1679_p5 = scmp.ne.s32.totalorder %s38_s13, %s1678_s22  ;;  %p1684_p7 = scmp.lt.s32.totalorder %s1678_s22, %s1678_s22 }
  0x2c   :  { %p1685_p8 = por %p1684_p7, %p1683_p6 }
  0x2e   :  { %p1686_p9 = pnand %p1685_p8, %p1679_p5 }
  0x30   :  { %1689 = shalt.err (!%p1686_p9)
}
  0x31   :  { %s1721_s0 = smov 128   ;;  %s1722_s18 = smov 8  }
  0x32   :  { %43 = dma.hbm_to_vmem [thread:$0]  %s2101_s2, 16384, %s38_s13, [#allocation6], %s1721_s0, %s1721_s0, %s1722_s18  }
  0x33   :  { %1712 = dma.done.wait [#allocation3], 128  }
  0x34   :  { %1713 = vsyncadd [#allocation3], 4294967168 }
  0x35   :  { %1714 = dma.done.wait [#allocation6], 16512  }
  0x36   :  { %1715 = vsyncadd [#allocation6], 4294950784  ;;  %v62_v0 = vlaneseq  ;;  %v60_v6 = vld [vmem:[#allocation2] sm:$0xff]  ;;  %v1800_v19 = vld [vmem:[#allocation5] sm:$0xff]  ;;  %s1723_s2 = smov 64   ;;  %s1724_s25 = smov 32  }
  0x37   :  { %s1725_s26 = smov 96   ;;  %v919_v20 = vld [vmem:[#allocation7 + $0x80] sm:$0xff]  ;;  %v920_v21 = vld [vmem:[#allocation7 + $0x88] sm:$0xff]  ;;  %v921_v25 = vld [vmem:[#allocation7 + $0x90] sm:$0xff]  ;;  %v1726_v41 = vmov 1983009808  }
  0x38   :  { %v1790_v1 = vshrl.u32 %v62_v0, 7  ;;  %v903_v22 = vld [vmem:[#allocation7] sm:$0xff]  ;;  %v1484_v23 = vpack.c.bf16 %v920_v21, %v919_v20  ;;  %v904_v24 = vld [vmem:[#allocation7 + $0x8] sm:$0xff]  ;;  %v922_v26 = vld [vmem:[#allocation7 + $0x98] sm:$0xff]  ;;  %v217_v42 = vunpack.c.l.s4 %v1726_v41  ;;  %v1727_v46 = vmov 1934713408  }
  0x39   :  { %v1486_v27 = vpack.c.bf16 %v904_v24, %v903_v22  ;;  %v1488_v28 = vpack.c.bf16 %v922_v26, %v921_v25  ;;  %v905_v29 = vld [vmem:[#allocation7 + $0x10] sm:$0xff]  ;;  %v906_v30 = vld [vmem:[#allocation7 + $0x18] sm:$0xff]  ;;  %v923_v31 = vld [vmem:[#allocation7 + $0xa0] sm:$0xff]  ;;  %v281_v47 = vunpack.c.l.s4 %v1727_v46  ;;  %vm854_vm0 = vcmask 261120   ;;  %s1728_s29 = smov [#allocation8]  }
  0x3a   :  { %v102_v2 = vsub.s32 2, %v1790_v1  ;;  %v64_v3 = vsub.s32 0, %v1790_v1  ;;  %v121_v4 = vsub.s32 3, %v1790_v1  ;;  %v83_v5 = vsub.s32 1, %v1790_v1  ;;  %1485 = vmatprep.subr.bf16.mxu0 %v1484_v23  ;;  %v924_v32 = vld [vmem:[#allocation7 + $0xa8] sm:$0xff]  ;;  %v951_v34 = vld [vmem:[#allocation7 + $0x180] sm:$0xff] }
  0x3b   :  { %v159_v11 = vsub.s32 5, %v1790_v1  ;;  %v140_v12 = vsub.s32 4, %v1790_v1  ;;  %v197_v15 = vsub.s32 7, %v1790_v1  ;;  %v178_v16 = vsub.s32 6, %v1790_v1  ;;  %1487 = vmatpush3.bf16.msra.mxu0 %v1486_v27  ;;  %v952_v35 = vld [vmem:[#allocation7 + $0x188] sm:$0xff]  ;;  %v907_v37 = vld [vmem:[#allocation7 + $0x20] sm:$0xff] }
  0x3c   :  { %v103_v7 = vrot.slane %v60_v6, %v102_v2  ;;  %v65_v8 = vrot.slane %v60_v6, %v64_v3  ;;  %v122_v9 = vrot.slane %v60_v6, %v121_v4  ;;  %v84_v10 = vrot.slane %v60_v6, %v83_v5  ;;  %1489 = vmatprep.subr.bf16.mxu0 %v1488_v28  ;;  %v908_v38 = vld [vmem:[#allocation7 + $0x28] sm:$0xff]  ;;  %v935_v59 = vld [vmem:[#allocation7 + $0x100] sm:$0xff]  ;;  %v925_v63 = vld [vmem:[#allocation7 + $0xb0] sm:$0xff]  ;;  %s1333_s30 = sshll.u32 %s1728_s29, 4  ;;  %s1334_s30 = int_to_ptr.vmem [resolvable:$true] %s1333_s30 }
  0x3d   :  { %v160_v13 = vrot.slane %v60_v6, %v159_v11  ;;  %v141_v14 = vrot.slane %v60_v6, %v140_v12  ;;  %v198_v17 = vrot.slane %v60_v6, %v197_v15  ;;  %v179_v18 = vrot.slane %v60_v6, %v178_v16  ;;  %v936_v60 = vld [vmem:[#allocation7 + $0x108] sm:$0xff]  ;;  %v926_v0 = vld [vmem:[#allocation7 + $0xb8] sm:$0xff]  ;;  %v909_v2 = vld [vmem:[#allocation7 + $0x30] sm:$0xff]  ;;  %s1690_s5 = scalar_lea.vmem %s1334_s30, 128  ;;  %p1695_p11 = scmp.lt.s32.totalorder %s1334_s30, %s1334_s30 }
  0x3e   :  { %105 = vbcast.lane.b32.xlu1 %v103_v7, 256  ;;  %67 = vbcast.lane.b32.xlu0 %v65_v8, 256  ;;  %v1490_v33 = vpack.c.bf16 %v906_v30, %v905_v29  ;;  %v1492_v36 = vpack.c.bf16 %v924_v32, %v923_v31  ;;  %v1516_v39 = vpack.c.bf16 %v952_v35, %v951_v34  ;;  %v218_v45 = vunpack.c.0.s8 %v217_v42  ;;  %v954_v11 = vld [vmem:[#allocation7 + $0x198] sm:$0xff]  ;;  %v937_v23 = vld [vmem:[#allocation7 + $0x110] sm:$0xff]  ;;  %v927_v25 = vld [vmem:[#allocation7 + $0xc0] sm:$0xff]  ;;  %p1691_p10 = scmp.ne.s32.totalorder %s1334_s30, %s1690_s5  ;;  %p1696_p12 = scmp.lt.s32.totalorder %s1690_s5, %s1690_s5 }
  0x3f   :  { %v1494_v40 = vpack.c.bf16 %v908_v38, %v907_v37  ;;  %v282_v52 = vunpack.c.0.s8 %v281_v47  ;;  %v938_v24 = vld [vmem:[#allocation7 + $0x118] sm:$0xff]  ;;  %v928_v31 = vld [vmem:[#allocation7 + $0xc8] sm:$0xff]  ;;  %v911_v32 = vld [vmem:[#allocation7 + $0x40] sm:$0xff]  ;;  %vm856_vm1 = vcmask 523264   ;;  %vm858_vm2 = vcmask 785408  }
  0x40   :  { %1517 = vmatprep.subr.bf16.mxu1 %v1516_v39  ;;  %1491 = vmatpush3.bf16.msra.mxu0 %v1490_v33  ;;  %v1809_v51 = vsub.s32 %v218_v45, %v1790_v1  ;;  %v1522_v30 = vpack.c.bf16 %v938_v24, %v937_v23  ;;  %v912_v33 = vld [vmem:[#allocation7 + $0x48] sm:$0xff]  ;;  %v955_v38 = vld [vmem:[#allocation7 + $0x1a0] sm:$0xff]  ;;  %v1500_v41 = vpack.c.bf16 %v928_v31, %v927_v25  ;;  %v929_v46 = vld [vmem:[#allocation7 + $0xd0] sm:$0xff]  ;;  %p1697_p13 = por %p1696_p12, %p1695_p11 }
  0x41   :  { %1493 = vmatprep.subr.bf16.mxu0 %v1492_v36  ;;  %v1815_v61 = vsub.s32 %v282_v52, %v1790_v1  ;;  %v956_v39 = vld [vmem:[#allocation7 + $0x1a8] sm:$0xff]  ;;  %v1502_v42 = vpack.c.bf16 %v912_v33, %v911_v32  ;;  %v913_v52 = vld [vmem:[#allocation7 + $0x50] sm:$0xff]  ;;  %v943_v31 = vld [vmem:[#allocation7 + $0x140] sm:$0xff] }
  0x42   :  { %124 = vbcast.lane.b32.xlu1 %v122_v9, 256  ;;  %86 = vbcast.lane.b32.xlu0 %v84_v10, 256  ;;  %v940_v45 = vld [vmem:[#allocation7 + $0x128] sm:$0xff]  ;;  %v933_v33 = vld [vmem:[#allocation7 + $0xf0] sm:$0xff]  ;;  %p1698_p0 = pnand %p1697_p13, %p1691_p10 }
  0x43   :  { %v944_v32 = vld [vmem:[#allocation7 + $0x148] sm:$0xff] }
  0x44   :  { %1495 = vmatpush3.bf16.msra.mxu0 %v1494_v40 }
  0x46   :  { %162 = vbcast.lane.b32.xlu1 %v160_v13, 256  ;;  %143 = vbcast.lane.b32.xlu0 %v141_v14, 256 }
  0x4a   :  { %200 = vbcast.lane.b32.xlu1 %v198_v17, 256  ;;  %181 = vbcast.lane.b32.xlu0 %v179_v18, 256 }
  0x4e   :  { %90 = vbcast.lane.b32.xlu1 %v84_v10, 264  ;;  %71 = vbcast.lane.b32.xlu0 %v65_v8, 264 }
  0x52   :  { %128 = vbcast.lane.b32.xlu1 %v122_v9, 264  ;;  %109 = vbcast.lane.b32.xlu0 %v103_v7, 264 }
  0x56   :  { %166 = vbcast.lane.b32.xlu1 %v160_v13, 264  ;;  %147 = vbcast.lane.b32.xlu0 %v141_v14, 264 }
  0x5a   :  { %204 = vbcast.lane.b32.xlu1 %v198_v17, 264  ;;  %185 = vbcast.lane.b32.xlu0 %v179_v18, 264 }
  0x5e   :  { %94 = vbcast.lane.b32.xlu1 %v84_v10, 272  ;;  %75 = vbcast.lane.b32.xlu0 %v65_v8, 272 }
  0x62   :  { %132 = vbcast.lane.b32.xlu1 %v122_v9, 272  ;;  %113 = vbcast.lane.b32.xlu0 %v103_v7, 272 }
  0x66   :  { %170 = vbcast.lane.b32.xlu1 %v160_v13, 272  ;;  %151 = vbcast.lane.b32.xlu0 %v141_v14, 272 }
  0x6a   :  { %208 = vbcast.lane.b32.xlu1 %v198_v17, 272  ;;  %189 = vbcast.lane.b32.xlu0 %v179_v18, 272 }
  0x6e   :  { %98 = vbcast.lane.b32.xlu1 %v84_v10, 280  ;;  %79 = vbcast.lane.b32.xlu0 %v65_v8, 280  ;;  %v1496_v8 = vpack.c.bf16 %v926_v0, %v925_v63  ;;  %v953_v10 = vld [vmem:[#allocation7 + $0x190] sm:$0xff] }
  0x70   :  { %1497 = vmatprep.subr.bf16.mxu0 %v1496_v8 }
  0x72   :  { %136 = vbcast.lane.b32.xlu1 %v122_v9, 280  ;;  %117 = vbcast.lane.b32.xlu0 %v103_v7, 280  ;;  %v1518_v7 = vpack.c.bf16 %v936_v60, %v935_v59  ;;  %v910_v9 = vld [vmem:[#allocation7 + $0x38] sm:$0xff] }
  0x73   :  { %v1498_v16 = vpack.c.bf16 %v910_v9, %v909_v2 }
  0x74   :  { %1519 = vmatpush3.bf16.msra.mxu1 %v1518_v7 }
  0x75   :  { %1499 = vmatpush3.bf16.msra.mxu0 %v1498_v16  ;;  %v915_v16 = vld [vmem:[#allocation7 + $0x60] sm:$0xff] }
  0x76   :  { %174 = vbcast.lane.b32.xlu1 %v160_v13, 280  ;;  %155 = vbcast.lane.b32.xlu0 %v141_v14, 280 }
  0x77   :  { %1501 = vmatprep.subr.bf16.mxu0 %v1500_v41  ;;  %v918_v41 = vld [vmem:[#allocation7 + $0x78] sm:$0xff] }
  0x79   :  { %1503 = vmatpush3.bf16.msra.mxu0 %v1502_v42 }
  0x7a   :  { %212 = vbcast.lane.b32.xlu1 %v198_v17, 280  ;;  %193 = vbcast.lane.b32.xlu0 %v179_v18, 280  ;;  %v1520_v17 = vpack.c.bf16 %v954_v11, %v953_v10  ;;  %v942_v11 = vld [vmem:[#allocation7 + $0x138] sm:$0xff] }
  0x7c   :  { %1521 = vmatprep.subr.bf16.mxu1 %v1520_v17 }
  0x7d   :  { %1523 = vmatpush3.bf16.msra.mxu1 %v1522_v30 }
  0x7e   :  { %885 = vrot.lane.b32.xlu0 %v1800_v19, %s1723_s2  ;;  %882 = vrot.lane.b32.xlu1 %v1800_v19, %s1724_s25 }
  0x82   :  { %888 = vrot.lane.b32.xlu0 %v1800_v19, %s1725_s26 }
  0xb0   :  { %v106_v43 = vpop.permute.xlu1 %105  ;;  %v68_v44 = vpop.permute.xlu0 %67 }
  0xb1   :  { %v214_v53 = vcombine.low %v68_v44, %v106_v43  ;;  %v215_v54 = vcombine.high %v68_v44, %v106_v43  ;;  %v1524_v43 = vpack.c.bf16 %v956_v39, %v955_v38  ;;  %v939_v44 = vld [vmem:[#allocation7 + $0x120] sm:$0xff]  ;;  %v934_v39 = vld [vmem:[#allocation7 + $0xf8] sm:$0xff] }
  0xb3   :  { %v1818_v62 = vrot.slane %v214_v53, %v1809_v51  ;;  %v229_v3 = vrot.slane %v215_v54, %v1809_v51  ;;  %v914_v53 = vld [vmem:[#allocation7 + $0x58] sm:$0xff]  ;;  %1525 = vmatprep.subr.bf16.mxu1 %v1524_v43 }
  0xb4   :  { %v125_v48 = vpop.permute.xlu1 %124  ;;  %v87_v49 = vpop.permute.xlu0 %86 }
  0xb5   :  { %v231_v50 = vcombine.high %v87_v49, %v125_v48  ;;  %v230_v55 = vcombine.low %v87_v49, %v125_v48 }
  0xb7   :  { %v1812_v58 = vrot.slane %v231_v50, %v1809_v51  ;;  %v1822_v4 = vrot.slane %v230_v55, %v1809_v51  ;;  %v930_v50 = vld [vmem:[#allocation7 + $0xd8] sm:$0xff] }
  0xb8   :  { %v163_v56 = vpop.permute.xlu1 %162  ;;  %v144_v57 = vpop.permute.xlu0 %143 }
  0xb9   :  { %v295_v15 = vcombine.high %v229_v3, %v1812_v58  ;;  %v278_v26 = vcombine.low %v1818_v62, %v1822_v4  ;;  %v294_v27 = vcombine.low %v229_v3, %v1812_v58  ;;  %v279_v40 = vcombine.high %v1818_v62, %v1822_v4  ;;  %v957_v4 = vld [vmem:[#allocation7 + $0x1b0] sm:$0xff] }
  0xba   :  { %v1504_v58 = vpack.c.bf16 %v930_v50, %v929_v46  ;;  %v1506_v62 = vpack.c.bf16 %v914_v53, %v913_v52  ;;  %v961_v46 = vld [vmem:[#allocation7 + $0x1d0] sm:$0xff]  ;;  %v962_v50 = vld [vmem:[#allocation7 + $0x1d8] sm:$0xff]  ;;  %v1534_v52 = vpack.c.bf16 %v944_v32, %v943_v31  ;;  %v1512_v53 = vpack.c.bf16 %v934_v39, %v933_v33  ;;  %v947_v32 = vld [vmem:[#allocation7 + $0x160] sm:$0xff] }
  0xbb   :  { %v1839_v47 = vrot.slane %v295_v15, %v1815_v61  ;;  %v1861_v2 = vrot.slane %v279_v40, %v1815_v61  ;;  %v1864_v3 = vrot.slane %v278_v26, %v1815_v61  ;;  %v917_v40 = vld [vmem:[#allocation7 + $0x70] sm:$0xff]  ;;  %v966_v39 = vld [vmem:[#allocation7 + $0x1f8] sm:$0xff] }
  0xbc   :  { %v201_v5 = vpop.permute.xlu1 %200  ;;  %v182_v6 = vpop.permute.xlu0 %181  ;;  %1505 = vmatprep.subr.bf16.mxu0 %v1504_v58 }
  0xbd   :  { %v262_v1 = vcombine.low %v163_v56, %v201_v5  ;;  %v263_v12 = vcombine.high %v163_v56, %v201_v5  ;;  %v246_v13 = vcombine.low %v144_v57, %v182_v6  ;;  %v247_v14 = vcombine.high %v144_v57, %v182_v6  ;;  %v958_v5 = vld [vmem:[#allocation7 + $0x1b8] sm:$0xff]  ;;  %v941_v6 = vld [vmem:[#allocation7 + $0x130] sm:$0xff]  ;;  %1507 = vmatpush3.bf16.msra.mxu0 %v1506_v62 }
  0xbe   :  { %v1848_v56 = vrot.slane %v294_v27, %v1815_v61  ;;  %v1526_v57 = vpack.c.bf16 %v940_v45, %v939_v44  ;;  %v1528_v24 = vpack.c.bf16 %v958_v5, %v957_v4  ;;  %v1530_v25 = vpack.c.bf16 %v942_v11, %v941_v6  ;;  %v945_v5 = vld [vmem:[#allocation7 + $0x150] sm:$0xff]  ;;  %v946_v6 = vld [vmem:[#allocation7 + $0x158] sm:$0xff]  ;;  %v963_v11 = vld [vmem:[#allocation7 + $0x1e0] sm:$0xff] }
  0xbf   :  { %v270_v18 = vrot.slane %v262_v1, %v1809_v51  ;;  %v277_v20 = vrot.slane %v263_v12, %v1809_v51  ;;  %v254_v21 = vrot.slane %v246_v13, %v1809_v51  ;;  %v261_v22 = vrot.slane %v247_v14, %v1809_v51  ;;  %v931_v1 = vld [vmem:[#allocation7 + $0xe0] sm:$0xff]  ;;  %v932_v12 = vld [vmem:[#allocation7 + $0xe8] sm:$0xff] }
  0xc0   :  { %v1832_v28 = vpop.permute.xlu1 %90  ;;  %v1834_v29 = vpop.permute.xlu0 %71  ;;  %1527 = vmatpush3.bf16.msra.mxu1 %v1526_v57  ;;  %v1508_v26 = vpack.c.bf16 %v932_v12, %v931_v1  ;;  %v1536_v4 = vpack.c.bf16 %v962_v50, %v961_v46  ;;  %v964_v1 = vld [vmem:[#allocation7 + $0x1e8] sm:$0xff]  ;;  %v950_v46 = vld [vmem:[#allocation7 + $0x178] sm:$0xff] }
  0xc1   :  { %v310_v34 = vcombine.low %v254_v21, %v270_v18  ;;  %v311_v35 = vcombine.high %v254_v21, %v270_v18  ;;  %v326_v36 = vcombine.low %v261_v22, %v277_v20  ;;  %v327_v37 = vcombine.high %v261_v22, %v277_v20  ;;  %v916_v20 = vld [vmem:[#allocation7 + $0x68] sm:$0xff]  ;;  %v959_v21 = vld [vmem:[#allocation7 + $0x1c0] sm:$0xff]  ;;  %1529 = vmatprep.subr.bf16.mxu1 %v1528_v24 }
  0xc2   :  { %v960_v22 = vld [vmem:[#allocation7 + $0x1c8] sm:$0xff]  ;;  %1509 = vmatprep.subr.bf16.mxu0 %v1508_v26 }
  0xc3   :  { %v1842_v48 = vrot.slane %v327_v37, %v1815_v61  ;;  %v1845_v49 = vrot.slane %v326_v36, %v1815_v61  ;;  %v1851_v59 = vrot.slane %v311_v35, %v1815_v61  ;;  %v1854_v60 = vrot.slane %v310_v34, %v1815_v61 }
  0xc4   :  { %v129_v54 = vpop.permute.xlu1 %128  ;;  %v110_v55 = vpop.permute.xlu0 %109  ;;  %v1510_v37 = vpack.c.bf16 %v916_v20, %v915_v16  ;;  %v1532_v38 = vpack.c.bf16 %v960_v22, %v959_v21  ;;  %1531 = vmatpush3.bf16.msra.mxu1 %v1530_v25  ;;  %v1540_v20 = vpack.c.bf16 %v964_v1, %v963_v11 }
  0xc5   :  { %v348_v63 = vcombine.low %v1839_v47, %v1842_v48  ;;  %v347_v0 = vcombine.high %v1848_v56, %v1845_v49  ;;  %v366_v7 = vcombine.low %v1832_v28, %v129_v54  ;;  %v367_v8 = vcombine.high %v1832_v28, %v129_v54 }
  0xc6   :  { %v350_v9 = vcombine.low %v1834_v29, %v110_v55  ;;  %v351_v10 = vcombine.high %v1834_v29, %v110_v55  ;;  %v346_v15 = vcombine.low %v1848_v56, %v1845_v49  ;;  %v344_v17 = vcombine.low %v1861_v2, %v1851_v59  ;;  %1511 = vmatpush3.bf16.msra.mxu0 %v1510_v37  ;;  %v948_v37 = vld [vmem:[#allocation7 + $0x168] sm:$0xff]  ;;  %v967_v56 = vld [vmem:[#allocation7 + $0x200] sm:$0xff] }
  0xc7   :  { %775 = vrot.lane.b32.xlu1 %v348_v63, %s1723_s2  ;;  %771 = vrot.lane.b32.xlu0 %v347_v0, %s1724_s25  ;;  %v343_v18 = vcombine.high %v1864_v3, %v1854_v60  ;;  %v342_v23 = vcombine.low %v1864_v3, %v1854_v60  ;;  %v1881_v27 = vrot.slane %v366_v7, %v1809_v51  ;;  %v983_v7 = vld [vmem:[#allocation7 + $0x280] sm:$0xff]  ;;  %v988_v60 = vld [vmem:[#allocation7 + $0x2a8] sm:$0xff] }
  0xc8   :  { %v167_v13 = vpop.permute.xlu1 %166  ;;  %v148_v14 = vpop.permute.xlu0 %147  ;;  %v1884_v28 = vrot.slane %v367_v8, %v1809_v51  ;;  %v1887_v29 = vrot.slane %v350_v9, %v1809_v51  ;;  %v1890_v30 = vrot.slane %v351_v10, %v1809_v51  ;;  %v349_v36 = vcombine.high %v1839_v47, %v1842_v48  ;;  %1533 = vmatprep.subr.bf16.mxu1 %v1532_v38  ;;  %v984_v10 = vld [vmem:[#allocation7 + $0x288] sm:$0xff]  ;;  %v965_v38 = vld [vmem:[#allocation7 + $0x1f0] sm:$0xff] }
  0xc9   :  { %v1514_v54 = vpack.c.bf16 %v918_v41, %v917_v40  ;;  %1513 = vmatprep.subr.bf16.mxu0 %v1512_v53  ;;  %1535 = vmatpush3.bf16.msra.mxu1 %v1534_v52  ;;  %v1542_v53 = vpack.c.bf16 %v948_v37, %v947_v32 }
  0xca   :  { %v414_v58 = vcombine.low %v1887_v29, %v1881_v27  ;;  %v430_v62 = vcombine.low %v1890_v30, %v1884_v28  ;;  %v415_v16 = vcombine.high %v1887_v29, %v1881_v27  ;;  %1537 = vmatprep.subr.bf16.mxu1 %v1536_v4  ;;  %v431_v33 = vcombine.high %v1890_v30, %v1884_v28 }
  0xcb   :  { %763 = vrot.lane.b32.xlu1 %v344_v17, %s1723_s2  ;;  %759 = vrot.lane.b32.xlu0 %v343_v18, %s1724_s25  ;;  %v345_v30 = vcombine.high %v1861_v2, %v1851_v59 }
  0xcc   :  { %v205_v34 = vpop.permute.xlu1 %204  ;;  %v186_v35 = vpop.permute.xlu0 %185  ;;  %1515 = vmatpush3.bf16.msra.mxu0 %v1514_v54  ;;  %v1916_v24 = vrot.slane %v430_v62, %v1815_v61  ;;  %v1919_v25 = vrot.slane %v414_v58, %v1815_v61  ;;  %v1544_v54 = vpack.c.bf16 %v966_v39, %v965_v38  ;;  %v1016_v58 = vld [vmem:[#allocation7 + $0x388] sm:$0xff] }
  0xcd   :  { %v398_v42 = vcombine.low %v167_v13, %v205_v34  ;;  %v399_v43 = vcombine.high %v167_v13, %v205_v34  ;;  %v382_v44 = vcombine.low %v148_v14, %v186_v35  ;;  %v383_v45 = vcombine.high %v148_v14, %v186_v35 }
  0xce   :  { %v1538_v13 = vpack.c.bf16 %v946_v6, %v945_v5  ;;  %v1548_v14 = vpack.c.bf16 %v984_v10, %v983_v7 }
  0xcf   :  { %v406_v55 = vrot.slane %v398_v42, %v1809_v51  ;;  %v413_v47 = vrot.slane %v399_v43, %v1809_v51  ;;  %v390_v48 = vrot.slane %v382_v44, %v1809_v51  ;;  %v397_v57 = vrot.slane %v383_v45, %v1809_v51  ;;  %779 = vrot.lane.b32.xlu0 %v349_v36, %s1725_s26  ;;  %v949_v45 = vld [vmem:[#allocation7 + $0x170] sm:$0xff] }
  0xd0   :  { %v95_v63 = vpop.permute.xlu1 %94  ;;  %v1905_v0 = vpop.permute.xlu0 %75  ;;  %1549 = vmatprep.subr.bf16.mxu0 %v1548_v14  ;;  %1539 = vmatpush3.bf16.msra.mxu1 %v1538_v13  ;;  %v429_v36 = vrot.slane %v415_v16, %v1815_v61 }
  0xd1   :  { %v446_v8 = vcombine.low %v390_v48, %v406_v55  ;;  %v462_v9 = vcombine.low %v397_v57, %v413_v47  ;;  %v447_v12 = vcombine.high %v390_v48, %v406_v55  ;;  %v463_v26 = vcombine.high %v397_v57, %v413_v47  ;;  %1541 = vmatprep.subr.bf16.mxu1 %v1540_v20  ;;  %v1015_v57 = vld [vmem:[#allocation7 + $0x380] sm:$0xff] }
  0xd2   :  { %v445_v48 = vrot.slane %v431_v33, %v1815_v61  ;;  %v1580_v10 = vpack.c.bf16 %v1016_v58, %v1015_v57 }
  0xd3   :  { %v1910_v17 = vrot.slane %v462_v9, %v1815_v61  ;;  %v1913_v18 = vrot.slane %v446_v8, %v1815_v61  ;;  %v461_v31 = vrot.slane %v447_v12, %v1815_v61  ;;  %v477_v44 = vrot.slane %v463_v26, %v1815_v61 }
  0xd4   :  { %v133_v21 = vpop.permute.xlu1 %132  ;;  %v114_v22 = vpop.permute.xlu0 %113  ;;  %1543 = vmatpush3.bf16.msra.mxu1 %v1542_v53 }
  0xd5   :  { %v483_v27 = vcombine.high %v1916_v24, %v1910_v17  ;;  %v479_v29 = vcombine.high %v1919_v25, %v1913_v18  ;;  %v502_v34 = vcombine.low %v95_v63, %v133_v21  ;;  %v503_v35 = vcombine.high %v95_v63, %v133_v21  ;;  %1545 = vmatprep.subr.bf16.mxu1 %v1544_v54 }
  0xd6   :  { %v486_v40 = vcombine.low %v1905_v0, %v114_v22  ;;  %v487_v41 = vcombine.high %v1905_v0, %v114_v22  ;;  %v482_v28 = vcombine.low %v1916_v24, %v1910_v17  ;;  %v480_v50 = vcombine.low %v429_v36, %v461_v31 }
  0xd7   :  { %795 = vrot.lane.b32.xlu1 %v483_v27, %s1724_s25  ;;  %783 = vrot.lane.b32.xlu0 %v479_v29, %s1724_s25  ;;  %v478_v52 = vcombine.low %v1919_v25, %v1913_v18  ;;  %v510_v55 = vrot.slane %v502_v34, %v1809_v51  ;;  %v517_v47 = vrot.slane %v503_v35, %v1809_v51 }
  0xd8   :  { %v171_v42 = vpop.permute.xlu1 %170  ;;  %v152_v43 = vpop.permute.xlu0 %151  ;;  %v494_v59 = vrot.slane %v486_v40, %v1809_v51  ;;  %v501_v2 = vrot.slane %v487_v41, %v1809_v51  ;;  %v1546_v0 = vpack.c.bf16 %v950_v46, %v949_v45  ;;  %v484_v8 = vcombine.low %v445_v48, %v477_v44 }
  0xd9   :  { %v481_v9 = vcombine.high %v429_v36, %v461_v31  ;;  %v485_v31 = vcombine.high %v445_v48, %v477_v44 }
  0xda   :  { %v550_v14 = vcombine.low %v494_v59, %v510_v55  ;;  %v566_v16 = vcombine.low %v501_v2, %v517_v47  ;;  %1547 = vmatpush3.bf16.msra.mxu1 %v1546_v0  ;;  %v551_v32 = vcombine.high %v494_v59, %v510_v55  ;;  %v567_v33 = vcombine.high %v501_v2, %v517_v47 }
  0xdb   :  { %767 = vrot.lane.b32.xlu1 %v345_v30, %s1725_s26  ;;  %787 = vrot.lane.b32.xlu0 %v480_v50, %s1723_s2 }
  0xdc   :  { %v209_v62 = vpop.permute.xlu1 %208  ;;  %v190_v63 = vpop.permute.xlu0 %189  ;;  %1581 = vmatprep.subr.bf16.mxu1 %v1580_v10  ;;  %v1961_v38 = vrot.slane %v566_v16, %v1815_v61  ;;  %v1964_v39 = vrot.slane %v550_v14, %v1815_v61  ;;  %v581_v45 = vrot.slane %v567_v33, %v1815_v61  ;;  %v565_v46 = vrot.slane %v551_v32, %v1815_v61 }
  0xdd   :  { %v534_v4 = vcombine.low %v171_v42, %v209_v62  ;;  %v535_v5 = vcombine.high %v171_v42, %v209_v62  ;;  %v518_v6 = vcombine.low %v152_v43, %v190_v63  ;;  %v519_v7 = vcombine.high %v152_v43, %v190_v63 }
  0xdf   :  { %v542_v11 = vrot.slane %v534_v4, %v1809_v51  ;;  %v549_v1 = vrot.slane %v535_v5, %v1809_v51  ;;  %v526_v12 = vrot.slane %v518_v6, %v1809_v51  ;;  %v533_v13 = vrot.slane %v519_v7, %v1809_v51  ;;  %799 = vrot.lane.b32.xlu1 %v484_v8, %s1723_s2 }
  0xe0   :  { %791 = vrot.lane.b32.xlu0 %v481_v9, %s1725_s26  ;;  %v99_v20 = vpop.permute.xlu1 %98  ;;  %v80_v21 = vpop.permute.xlu0 %79 }
  0xe1   :  { %v582_v22 = vcombine.low %v526_v12, %v542_v11  ;;  %v583_v26 = vcombine.high %v526_v12, %v542_v11  ;;  %v598_v27 = vcombine.low %v533_v13, %v549_v1  ;;  %v599_v29 = vcombine.high %v533_v13, %v549_v1 }
  0xe3   :  { %v1954_v34 = vrot.slane %v598_v27, %v1815_v61  ;;  %v1957_v35 = vrot.slane %v582_v22, %v1815_v61  ;;  %803 = vrot.lane.b32.xlu1 %v485_v31, %s1725_s26  ;;  %v613_v40 = vrot.slane %v599_v29, %v1815_v61  ;;  %v597_v41 = vrot.slane %v583_v26, %v1815_v61 }
  0xe4   :  { %v137_v36 = vpop.permute.xlu1 %136  ;;  %v118_v37 = vpop.permute.xlu0 %117 }
  0xe5   :  { %v639_v42 = vcombine.high %v99_v20, %v137_v36  ;;  %v623_v43 = vcombine.high %v80_v21, %v118_v37  ;;  %v619_v30 = vcombine.high %v1961_v38, %v1954_v34  ;;  %v615_v44 = vcombine.high %v1964_v39, %v1957_v35 }
  0xe6   :  { %v638_v50 = vcombine.low %v99_v20, %v137_v36  ;;  %v622_v53 = vcombine.low %v80_v21, %v118_v37  ;;  %v618_v47 = vcombine.low %v1961_v38, %v1954_v34  ;;  %v620_v48 = vcombine.low %v581_v45, %v613_v40 }
  0xe7   :  { %819 = vrot.lane.b32.xlu1 %v619_v30, %s1724_s25  ;;  %807 = vrot.lane.b32.xlu0 %v615_v44, %s1724_s25  ;;  %v653_v57 = vrot.slane %v639_v42, %v1809_v51  ;;  %v637_v58 = vrot.slane %v623_v43, %v1809_v51  ;;  %v616_v59 = vcombine.low %v565_v46, %v597_v41 }
  0xe8   :  { %v175_v54 = vpop.permute.xlu1 %174  ;;  %v156_v55 = vpop.permute.xlu0 %155  ;;  %v614_v2 = vcombine.low %v1964_v39, %v1957_v35  ;;  %v646_v62 = vrot.slane %v638_v50, %v1809_v51  ;;  %v630_v63 = vrot.slane %v622_v53, %v1809_v51  ;;  %v621_v11 = vcombine.high %v581_v45, %v613_v40  ;;  %v1011_v35 = vld [vmem:[#allocation7 + $0x360] sm:$0xff]  ;;  %v1012_v39 = vld [vmem:[#allocation7 + $0x368] sm:$0xff] }
  0xe9   :  { %v702_v9 = vcombine.low %v637_v58, %v653_v57  ;;  %v703_v10 = vcombine.high %v637_v58, %v653_v57  ;;  %v617_v26 = vcombine.high %v565_v46, %v597_v41 }
  0xea   :  { %v686_v16 = vcombine.low %v630_v63, %v646_v62  ;;  %v687_v42 = vcombine.high %v630_v63, %v646_v62 }
  0xeb   :  { %823 = vrot.lane.b32.xlu1 %v620_v48, %s1723_s2  ;;  %811 = vrot.lane.b32.xlu0 %v616_v59, %s1723_s2  ;;  %v717_v27 = vrot.slane %v703_v10, %v1815_v61  ;;  %v1994_v31 = vrot.slane %v702_v9, %v1815_v61  ;;  %v985_v10 = vld [vmem:[#allocation7 + $0x290] sm:$0xff] }
  0xec   :  { %v213_v0 = vpop.permute.xlu1 %212  ;;  %v194_v4 = vpop.permute.xlu0 %193  ;;  %v2006_v40 = vrot.slane %v686_v16, %v1815_v61  ;;  %v701_v46 = vrot.slane %v687_v42, %v1815_v61  ;;  %v972_v42 = vld [vmem:[#allocation7 + $0x228] sm:$0xff] }
  0xed   :  { %v670_v5 = vcombine.low %v175_v54, %v213_v0  ;;  %v671_v6 = vcombine.high %v175_v54, %v213_v0  ;;  %v654_v7 = vcombine.low %v156_v55, %v194_v4  ;;  %v655_v8 = vcombine.high %v156_v55, %v194_v4 }
  0xef   :  { %v678_v1 = vrot.slane %v670_v5, %v1809_v51  ;;  %v685_v12 = vrot.slane %v671_v6, %v1809_v51  ;;  %v662_v13 = vrot.slane %v654_v7, %v1809_v51  ;;  %v669_v14 = vrot.slane %v655_v8, %v1809_v51  ;;  %827 = vrot.lane.b32.xlu1 %v621_v11, %s1725_s26  ;;  %v986_v11 = vld [vmem:[#allocation7 + $0x298] sm:$0xff] }
  0xf0   :  { %v886_v54 = vpop.permute.xlu0 %885  ;;  %v883_v48 = vpop.permute.xlu1 %882 }
  0xf1   :  { %v718_v20 = vcombine.low %v662_v13, %v678_v1  ;;  %v734_v21 = vcombine.low %v669_v14, %v685_v12  ;;  %v735_v22 = vcombine.high %v669_v14, %v685_v12  ;;  %v719_v51 = vcombine.high %v662_v13, %v678_v1 }
  0xf2   :  { %v891_v58 = vsel %vm854_vm0, %v1800_v19, %v883_v48 }
  0xf3   :  { %v749_v29 = vrot.slane %v735_v22, %v1815_v61  ;;  %v1997_v32 = vrot.slane %v734_v21, %v1815_v61  ;;  %v2000_v33 = vrot.slane %v718_v20, %v1815_v61  ;;  %815 = vrot.lane.b32.xlu1 %v617_v26, %s1725_s26  ;;  %v733_v44 = vrot.slane %v719_v51, %v1815_v61  ;;  %v969_v22 = vld [vmem:[#allocation7 + $0x210] sm:$0xff]  ;;  %v970_v26 = vld [vmem:[#allocation7 + $0x218] sm:$0xff] }
  0xf4   :  { %v889_v55 = vpop.permute.xlu0 %888  ;;  %v892_v63 = vsel %vm856_vm1, %v891_v58, %v886_v54  ;;  %v1552_v21 = vpack.c.bf16 %v986_v11, %v985_v10  ;;  %v973_v58 = vld [vmem:[#allocation7 + $0x230] sm:$0xff]  ;;  %v976_v10 = vld [vmem:[#allocation7 + $0x248] sm:$0xff]  ;;  %v1003_v11 = vld [vmem:[#allocation7 + $0x320] sm:$0xff] }
  0xf5   :  { %v756_v36 = vcombine.low %v717_v27, %v749_v29  ;;  %v755_v37 = vcombine.high %v1994_v31, %v1997_v32  ;;  %v754_v41 = vcombine.low %v1994_v31, %v1997_v32  ;;  %v750_v43 = vcombine.low %v2006_v40, %v2000_v33  ;;  %v1030_v31 = vld [vmem:[#allocation7 + $0x3f8] sm:$0xff] }
  0xf6   :  { %v751_v30 = vcombine.high %v2006_v40, %v2000_v33  ;;  %v757_v45 = vcombine.high %v717_v27, %v749_v29  ;;  %v752_v50 = vcombine.low %v701_v46, %v733_v44  ;;  %v753_v53 = vcombine.high %v701_v46, %v733_v44  ;;  %v987_v27 = vld [vmem:[#allocation7 + $0x2a0] sm:$0xff]  ;;  %v1000_v46 = vld [vmem:[#allocation7 + $0x308] sm:$0xff] }
  0xf7   :  { %843 = vrot.lane.b32.xlu0 %v755_v37, %s1724_s25  ;;  %847 = vrot.lane.b32.xlu1 %v756_v36, %s1723_s2  ;;  %v2031_v5 = vsel %vm858_vm2, %v892_v63, %v889_v55  ;;  %v1554_v29 = vpack.c.bf16 %v970_v26, %v969_v22  ;;  %v1556_v36 = vpack.c.bf16 %v988_v60, %v987_v27  ;;  %v971_v37 = vld [vmem:[#allocation7 + $0x220] sm:$0xff]  ;;  %v1018_v55 = vld [vmem:[#allocation7 + $0x398] sm:$0xff] }
  0xfb   :  { %831 = vrot.lane.b32.xlu0 %v751_v30, %s1724_s25  ;;  %851 = vrot.lane.b32.xlu1 %v757_v45, %s1725_s26  ;;  %v999_v30 = vld [vmem:[#allocation7 + $0x300] sm:$0xff] }
  0xfc   :  { %v1582_v24 = vpack.c.bf16 %v1000_v46, %v999_v30  ;;  %v996_v30 = vld [vmem:[#allocation7 + $0x2e8] sm:$0xff]  ;;  %v1023_v46 = vld [vmem:[#allocation7 + $0x3c0] sm:$0xff] }
  0xff   :  { %835 = vrot.lane.b32.xlu0 %v752_v50, %s1723_s2  ;;  %v989_v50 = vld [vmem:[#allocation7 + $0x2b0] sm:$0xff] }
 0x103   :  { %839 = vrot.lane.b32.xlu0 %v753_v53, %s1725_s26  ;;  %v990_v53 = vld [vmem:[#allocation7 + $0x2b8] sm:$0xff] }
 0x139   :  { %v772_v57 = vpop.permute.xlu0 %771  ;;  %v776_v62 = vpop.permute.xlu1 %775 }
 0x13a   :  { %v860_v61 = vsel %vm854_vm0, %v346_v15, %v772_v57  ;;  %v968_v15 = vld [vmem:[#allocation7 + $0x208] sm:$0xff]  ;;  %v1558_v57 = vpack.c.bf16 %v972_v42, %v971_v37  ;;  %v1006_v37 = vld [vmem:[#allocation7 + $0x338] sm:$0xff]  ;;  %v995_v42 = vld [vmem:[#allocation7 + $0x2e0] sm:$0xff] }
 0x13b   :  { %v861_v4 = vsel %vm856_vm1, %v860_v61, %v776_v62  ;;  %v1550_v16 = vpack.c.bf16 %v968_v15, %v967_v56  ;;  %v1001_v62 = vld [vmem:[#allocation7 + $0x310] sm:$0xff]  ;;  %v975_v15 = vld [vmem:[#allocation7 + $0x240] sm:$0xff]  ;;  %v1572_v38 = vpack.c.bf16 %v996_v30, %v995_v42 }
 0x13c   :  { %v1566_v26 = vpack.c.bf16 %v976_v10, %v975_v15 }
 0x13d   :  { %v760_v59 = vpop.permute.xlu0 %759  ;;  %v764_v7 = vpop.permute.xlu1 %763 }
 0x13e   :  { %v855_v49 = vsel %vm854_vm0, %v342_v23, %v760_v59  ;;  %v974_v59 = vld [vmem:[#allocation7 + $0x238] sm:$0xff] }
 0x13f   :  { %v857_v12 = vsel %vm856_vm1, %v855_v49, %v764_v7  ;;  %v1019_v7 = vld [vmem:[#allocation7 + $0x3a0] sm:$0xff] }
 0x141   :  { %v780_v0 = vpop.permute.xlu0 %779 }
 0x142   :  { %v862_v6 = vsel %vm858_vm2, %v861_v4, %v780_v0  ;;  %v1002_v0 = vld [vmem:[#allocation7 + $0x318] sm:$0xff]  ;;  %v991_v4 = vld [vmem:[#allocation7 + $0x2c0] sm:$0xff] }
 0x143   :  { %v895_v19 = vmul.f32 %v2031_v5, %v862_v6  ;;  %v992_v6 = vld [vmem:[#allocation7 + $0x2c8] sm:$0xff]  ;;  %v1586_v49 = vpack.c.bf16 %v1002_v0, %v1001_v62  ;;  %v981_v0 = vld [vmem:[#allocation7 + $0x270] sm:$0xff] }
 0x144   :  { %v1564_v56 = vpack.c.bf16 %v992_v6, %v991_v4  ;;  %v982_v4 = vld [vmem:[#allocation7 + $0x278] sm:$0xff] }
 0x145   :  { %1095 = vmatprep.mubr.f32.mxu0 %v895_v19 }
 0x149   :  { %v796_v8 = vpop.permute.xlu1 %795  ;;  %v784_v9 = vpop.permute.xlu0 %783 }
 0x14a   :  { %v863_v51 = vsel %vm854_vm0, %v478_v52, %v784_v9  ;;  %v866_v44 = vsel %vm854_vm0, %v482_v28, %v796_v8  ;;  %v1017_v52 = vld [vmem:[#allocation7 + $0x390] sm:$0xff]  ;;  %v1560_v28 = vpack.c.bf16 %v990_v53, %v989_v50  ;;  %v1020_v8 = vld [vmem:[#allocation7 + $0x3a8] sm:$0xff]  ;;  %v1562_v9 = vpack.c.bf16 %v974_v59, %v973_v58  ;;  %v1026_v59 = vld [vmem:[#allocation7 + $0x3d8] sm:$0xff] }
 0x14b   :  { %v1584_v63 = vpack.c.bf16 %v1018_v55, %v1017_v52  ;;  %v1024_v50 = vld [vmem:[#allocation7 + $0x3c8] sm:$0xff]  ;;  %v1007_v52 = vld [vmem:[#allocation7 + $0x340] sm:$0xff]  ;;  %v1025_v58 = vld [vmem:[#allocation7 + $0x3d0] sm:$0xff] }
 0x14d   :  { %v768_v1 = vpop.permute.xlu1 %767  ;;  %v788_v13 = vpop.permute.xlu0 %787 }
 0x14e   :  { %v859_v14 = vsel %vm858_vm2, %v857_v12, %v768_v1  ;;  %v864_v45 = vsel %vm856_vm1, %v863_v51, %v788_v13  ;;  %v1588_v1 = vpack.c.bf16 %v1020_v8, %v1019_v7  ;;  %v1004_v12 = vld [vmem:[#allocation7 + $0x328] sm:$0xff]  ;;  %v993_v13 = vld [vmem:[#allocation7 + $0x2d0] sm:$0xff]  ;;  %v1010_v8 = vld [vmem:[#allocation7 + $0x358] sm:$0xff] }
 0x14f   :  { %v894_v20 = vmul.f32 %v2031_v5, %v859_v14  ;;  %v994_v14 = vld [vmem:[#allocation7 + $0x2d8] sm:$0xff]  ;;  %v1590_v27 = vpack.c.bf16 %v1004_v12, %v1003_v11  ;;  %v1009_v7 = vld [vmem:[#allocation7 + $0x350] sm:$0xff]  ;;  %v1578_v11 = vpack.c.bf16 %v982_v4, %v981_v0 }
 0x150   :  { %v1568_v60 = vpack.c.bf16 %v994_v14, %v993_v13  ;;  %v1602_v12 = vpack.c.bf16 %v1010_v8, %v1009_v7 }
 0x151   :  { %v800_v3 = vpop.permute.xlu1 %799  ;;  %1096 = vmatmul.mubr.f32.vlgmr.msra.gmra.mrb[0].mxu0 %v894_v20  ;;  %v1021_v20 = vld [vmem:[#allocation7 + $0x3b0] sm:$0xff] }
 0x152   :  { %1551 = vmatpush3.bf16.msra.mxu0 %v1550_v16  ;;  %v792_v23 = vpop.permute.xlu0 %791  ;;  %v867_v54 = vsel %vm856_vm1, %v866_v44, %v800_v3  ;;  %v977_v3 = vld [vmem:[#allocation7 + $0x250] sm:$0xff] }
 0x153   :  { %1553 = vmatprep.subr.bf16.mxu0 %v1552_v21  ;;  %v865_v18 = vsel %vm858_vm2, %v864_v45, %v792_v23  ;;  %v1022_v21 = vld [vmem:[#allocation7 + $0x3b8] sm:$0xff] }
 0x154   :  { %v896_v61 = vmul.f32 %v2031_v5, %v865_v18  ;;  %v978_v23 = vld [vmem:[#allocation7 + $0x258] sm:$0xff] }
 0x155   :  { %v804_v25 = vpop.permute.xlu1 %803 }
 0x156   :  { %1555 = vmatpush3.bf16.msra.mxu0 %v1554_v29  ;;  %v868_v48 = vsel %vm858_vm2, %v867_v54, %v804_v25  ;;  %v1005_v29 = vld [vmem:[#allocation7 + $0x330] sm:$0xff]  ;;  %v1570_v54 = vpack.c.bf16 %v978_v23, %v977_v3  ;;  %v980_v25 = vld [vmem:[#allocation7 + $0x268] sm:$0xff]  ;;  %v1014_v23 = vld [vmem:[#allocation7 + $0x378] sm:$0xff] }
 0x157   :  { %1557 = vmatprep.subr.bf16.mxu0 %v1556_v36  ;;  %v897_v17 = vmul.f32 %v2031_v5, %v868_v48  ;;  %v1592_v36 = vpack.c.bf16 %v1022_v21, %v1021_v20  ;;  %v1594_v34 = vpack.c.bf16 %v1006_v37, %v1005_v29  ;;  %v1596_v48 = vpack.c.bf16 %v1024_v50, %v1023_v46  ;;  %v1029_v21 = vld [vmem:[#allocation7 + $0x3f0] sm:$0xff] }
 0x158   :  { %v1013_v3 = vld [vmem:[#allocation7 + $0x370] sm:$0xff] }
 0x159   :  { %v820_v19 = vpop.permute.xlu1 %819  ;;  %1165 = vmatprep.mubr.f32.mxu1 %v897_v17  ;;  %v808_v22 = vpop.permute.xlu0 %807  ;;  %v997_v17 = vld [vmem:[#allocation7 + $0x2f0] sm:$0xff] }
 0x15a   :  { %1559 = vmatpush3.bf16.msra.mxu0 %v1558_v57  ;;  %1166 = vmatmul.mubr.f32.vlgmr.msra.gmra.mrb[0].mxu1 %v896_v61  ;;  %v872_v51 = vsel %vm854_vm0, %v618_v47, %v820_v19  ;;  %v979_v47 = vld [vmem:[#allocation7 + $0x260] sm:$0xff]  ;;  %v1008_v57 = vld [vmem:[#allocation7 + $0x348] sm:$0xff]  ;;  %v1600_v19 = vpack.c.bf16 %v1026_v59, %v1025_v58  ;;  %v869_v15 = vsel %vm854_vm0, %v614_v2, %v808_v22 }
 0x15b   :  { %1583 = vmatpush3.bf16.msra.mxu1 %v1582_v24  ;;  %1561 = vmatprep.subr.bf16.mxu0 %v1560_v28  ;;  %v998_v24 = vld [vmem:[#allocation7 + $0x2f8] sm:$0xff]  ;;  %v1574_v62 = vpack.c.bf16 %v980_v25, %v979_v47  ;;  %v1598_v61 = vpack.c.bf16 %v1008_v57, %v1007_v52 }
 0x15c   :  { %1585 = vmatprep.subr.bf16.mxu1 %v1584_v63  ;;  %v1576_v63 = vpack.c.bf16 %v998_v24, %v997_v17 }
 0x15d   :  { %v824_v16 = vpop.permute.xlu1 %823  ;;  %v812_v55 = vpop.permute.xlu0 %811 }
 0x15e   :  { %1563 = vmatpush3.bf16.msra.mxu0 %v1562_v9  ;;  %v873_v44 = vsel %vm856_vm1, %v872_v51, %v824_v16  ;;  %v1610_v51 = vpack.c.bf16 %v1014_v23, %v1013_v3 }
 0x15f   :  { %1587 = vmatpush3.bf16.msra.mxu1 %v1586_v49  ;;  %1565 = vmatprep.subr.bf16.mxu0 %v1564_v56  ;;  %v1027_v49 = vld [vmem:[#allocation7 + $0x3e0] sm:$0xff]  ;;  %v1028_v56 = vld [vmem:[#allocation7 + $0x3e8] sm:$0xff] }
 0x160   :  { %1589 = vmatprep.subr.bf16.mxu1 %v1588_v1  ;;  %v870_v1 = vsel %vm856_vm1, %v869_v15, %v812_v55  ;;  %v1604_v16 = vpack.c.bf16 %v1028_v56, %v1027_v49 }
 0x161   :  { %v828_v45 = vpop.permute.xlu1 %827 }
 0x162   :  { %v874_v53 = vsel %vm858_vm2, %v873_v44, %v828_v45  ;;  %1567 = vmatpush3.bf16.msra.mxu0 %v1566_v26  ;;  %v1606_v26 = vpack.c.bf16 %v1012_v39, %v1011_v35 }
 0x163   :  { %v899_v18 = vmul.f32 %v2031_v5, %v874_v53  ;;  %1591 = vmatpush3.bf16.msra.mxu1 %v1590_v27  ;;  %1569 = vmatprep.subr.bf16.mxu0 %v1568_v60  ;;  %v1608_v60 = vpack.c.bf16 %v1030_v31, %v1029_v21 }
 0x164   :  { %1593 = vmatprep.subr.bf16.mxu1 %v1592_v36 }
 0x165   :  { %v816_v28 = vpop.permute.xlu1 %815  ;;  %1235 = vmatprep.mubr.f32.mxu0 %v899_v18 }
 0x166   :  { %1571 = vmatpush3.bf16.msra.mxu0 %v1570_v54  ;;  %v871_v13 = vsel %vm858_vm2, %v870_v1, %v816_v28 }
 0x167   :  { %1595 = vmatpush3.bf16.msra.mxu1 %v1594_v34  ;;  %1573 = vmatprep.subr.bf16.mxu0 %v1572_v38 }
 0x168   :  { %1597 = vmatprep.subr.bf16.mxu1 %v1596_v48 }
 0x169   :  { %v844_v6 = vpop.permute.xlu0 %843  ;;  %v848_v9 = vpop.permute.xlu1 %847 }
 0x16a   :  { %1575 = vmatpush3.bf16.msra.mxu0 %v1574_v62  ;;  %v878_v10 = vsel %vm854_vm0, %v754_v41, %v844_v6  ;;  %v898_v41 = vmul.f32 %v2031_v5, %v871_v13 }
 0x16b   :  { %1599 = vmatpush3.bf16.msra.mxu1 %v1598_v61  ;;  %1577 = vmatprep.subr.bf16.mxu0 %v1576_v63  ;;  %v879_v20 = vsel %vm856_vm1, %v878_v10, %v848_v9 }
 0x16c   :  { %1601 = vmatprep.subr.bf16.mxu1 %v1600_v19 }
 0x16d   :  { %v832_v14 = vpop.permute.xlu0 %831  ;;  %v852_v2 = vpop.permute.xlu1 %851 }
 0x16e   :  { %v880_v32 = vsel %vm858_vm2, %v879_v20, %v852_v2  ;;  %1579 = vmatpush3.bf16.msra.mxu0 %v1578_v11  ;;  %v875_v29 = vsel %vm854_vm0, %v750_v43, %v832_v14 }
 0x16f   :  { %v901_v22 = vmul.f32 %v2031_v5, %v880_v32  ;;  %1603 = vmatpush3.bf16.msra.mxu1 %v1602_v12 }
 0x170   :  { %1605 = vmatprep.subr.bf16.mxu1 %v1604_v16 }
 0x171   :  { %v836_v27 = vpop.permute.xlu0 %835  ;;  %1236 = vmatmul.mubr.f32.vlgmr.msra.gmra.mrb[2].mxu0 %v898_v41  ;;  %1305 = vmatprep.mubr.f32.mxu1 %v901_v22 }
 0x172   :  { %v876_v36 = vsel %vm856_vm1, %v875_v29, %v836_v27 }
 0x173   :  { %1607 = vmatpush3.bf16.msra.mxu1 %v1606_v26 }
 0x174   :  { %1609 = vmatprep.subr.bf16.mxu1 %v1608_v60 }
 0x175   :  { %v840_v37 = vpop.permute.xlu0 %839 }
 0x176   :  { %v877_v42 = vsel %vm858_vm2, %v876_v36, %v840_v37 }
 0x177   :  { %v900_v30 = vmul.f32 %v2031_v5, %v877_v42  ;;  %1611 = vmatpush3.bf16.msra.mxu1 %v1610_v51  ;;  %v1343_v5 = vld [vmem:[%s2102_s3] ss:$0 sm:$0xff] }
 0x17a   :  { %1306 = vmatmul.mubr.f32.vlgmr.msra.gmra.mrb[2].mxu1 %v900_v30 }
 0x224   :  { %v1376_v44 = vpop.f32.mrb[0].mxu0 }
 0x225   :  { %v1377_v45 = vpop.f32.mrb[1].mxu0 }
 0x226   :  { %v1378_v46 = vadd.f32 %v1377_v45, %v1376_v44 }
 0x22d   :  { %v1411_v50 = vpop.f32.mrb[0].mxu1 }
 0x22e   :  { %v1412_v53 = vpop.f32.mrb[1].mxu1 }
 0x22f   :  { %v1413_v33 = vadd.f32 %v1412_v53, %v1411_v50 }
 0x231   :  { %v1168_v40 = vadd.f32 %v1413_v33, %v1378_v46 }
 0x244   :  { %v1446_v43 = vpop.f32.mrb[2].mxu0 }
 0x245   :  { %v1447_v54 = vpop.f32.mrb[3].mxu0 }
 0x246   :  { %v1448_v18 = vadd.f32 %v1447_v54, %v1446_v43 }
 0x248   :  { %v1238_v34 = vadd.f32 %v1448_v18, %v1168_v40 }
 0x24d   :  { %v1481_v38 = vpop.f32.mrb[2].mxu1 }
 0x24e   :  { %v1482_v47 = vpop.f32.mrb[3].mxu1 }
 0x24f   :  { %v1483_v25 = vadd.f32 %v1482_v47, %v1481_v38 }
 0x251   :  { %v1308_v52 = vadd.f32 %v1483_v25, %v1238_v34 }
 0x253   :  { %v1324_v55 = vadd.f32 %v1343_v5, %v1308_v52 }
 0x255   :  { %v1325_v48 = vmax.f32 %v1324_v55, 0.0 }
 0x257   :  { %1326 = vst [vmem:[#allocation8] sm:$0xff] %v1325_v48 }
 0x258   :  { %1701 = shalt.err (!%p1698_p0)
}
 0x259   :  { %s1702_s8 = scalar_lea.hbm %s2103_s4, 128 }
 0x25a   :  { %p1703_p1 = scmp.ne.s32.totalorder %s2103_s4, %s1702_s8  ;;  %p1706_p2 = scmp.lt.u32.totalorder %s1702_s8, %s2103_s4 }
 0x25c   :  { %p1708_p3 = pnand %p1706_p2, %p1703_p1 }
 0x25e   :  { %1711 = shalt.err (!%p1708_p3)
}
 0x25f   :  { %1336 = dma.vmem_to_hbm [thread:$0]  %s1334_s30, 128, %s2103_s4, [#allocation4]  }
 0x260   :  { %1716 = dma.done.wait [#allocation4], 128  }
 0x261   :  { %1717 = vsyncadd [#allocation4], 4294967168 }
 0x262   :  { %1340 = vsyncpa [#allocation3], 1 }
 0x263   :  { %1341 = vsyncpa [#allocation6], 1 }
 0x264   :  { %1342 = vsyncpa [#allocation4], 1 }

</bundles_post_ra>
